<compile_context>
chip_gen: v7x
topology: tpu7x:2x2x1
jax: 0.10.0
libtpu: 0.0.40
codegen_flags: <defaults>
</compile_context>

<pallas_src>
import functools
from dataclasses import dataclass

import jax
import jax.numpy as jnp
from jax.experimental import pallas as pl
from jax.experimental.pallas import tpu as pltpu


@dataclass(frozen=True)  # frozen => hashable => usable as a static jit arg
class ConvConfig:
    in_channels: int
    out_channels: int
    kernel_size: int
    stride: int
    padding: int
    bias: bool


# ----------------------------------------------------------------------------
# Kernels
# ----------------------------------------------------------------------------
def _make_fused_kernel(batch, k, w_out, l_out):
    """stride == 1 kernel: vertical kernel offsets are taken as static lane
    slices of the flattened (horizontally pre-shifted) image, so the 9x im2col
    tensor is never materialized in HBM."""

    def kernel(y_ref, w_ref, b_ref, o_ref):
        # y_ref: (B, C_in, k, H_pad*W_out)  -- k horizontally shifted copies
        # w_ref: (k*k, C_out, C_in)
        # b_ref: (C_out, 1)
        # o_ref: (B, C_out, L)              -- L = H_out*W_out (lane-dense)
        for b in range(batch):
            acc = None
            for i in range(k):          # vertical offset  -> lane slice
                for j in range(k):      # horizontal offset -> pre-shifted copy
                    patch = y_ref[b, :, j, i * w_out:i * w_out + l_out]  # (C_in, L)
                    contrib = jnp.dot(w_ref[i * k + j], patch,
                                      preferred_element_type=jnp.float32)  # (C_out, L)
                    acc = contrib if acc is None else acc + contrib
            o_ref[b] = (acc + b_ref[...]).astype(o_ref.dtype)

    return kernel


def _make_unfold_kernel(batch):
    """General-stride kernel: one (C_out, KC) @ (KC, L) matmul per image, with
    the patch tensor already laid out (KC, L) so the output is lane-dense."""

    def kernel(y_ref, w_ref, b_ref, o_ref):
        # y_ref: (B, KC, L); w_ref: (C_out, KC); b_ref: (C_out, 1); o_ref: (B, C_out, L)
        for b in range(batch):
            out = jnp.dot(w_ref[...], y_ref[b],
                          preferred_element_type=jnp.float32)  # (C_out, L)
            o_ref[b] = (out + b_ref[...]).astype(o_ref.dtype)

    return kernel


def _full_spec(arr):
    """Whole-array block (single grid step)."""
    nd = arr.ndim
    return pl.BlockSpec(arr.shape, lambda g: (0,) * nd)


# ----------------------------------------------------------------------------
# Forward
# ----------------------------------------------------------------------------
@functools.partial(jax.jit, static_argnames=("config",))
def my_conv2d_forward(x, weight, bias, config: ConvConfig):
    B, C_in, H, W = x.shape
    k, s, p = config.kernel_size, config.stride, config.padding
    C_out = config.out_channels
    H_out = (H + 2 * p - k) // s + 1
    W_out = (W + 2 * p - k) // s + 1
    L = H_out * W_out
    KC = C_in * k * k

    x_pad = jnp.pad(x, ((0, 0), (0, 0), (p, p), (p, p)))
    H_pad = H + 2 * p

    # Bias column (C_out, 1).  If the module has no bias we pass explicit zeros
    # (the kernel always adds it), matching `self.bias = None` semantics.
    if config.bias and bias is not None:
        b_col = bias.reshape(C_out, 1).astype(x.dtype)
    else:
        b_col = jnp.zeros((C_out, 1), x.dtype)

    if s == 1:
        # Mostly-fused im2col: only k horizontally-shifted copies (k-fold, not
        # k*k-fold); flattening (H_pad, W_out) -> H_pad*W_out in the wrapper
        # makes each vertical offset a contiguous lane slice in the kernel.
        y = jnp.stack([x_pad[:, :, :, j:j + W_out] for j in range(k)], axis=2)
        y = y.reshape(B, C_in, k, H_pad * W_out)
        w_kk = jnp.transpose(weight, (2, 3, 0, 1)).reshape(k * k, C_out, C_in)
        kernel = _make_fused_kernel(B, k, W_out, L)
        in_arrays = (y, w_kk, b_col)
    else:
        # General stride: build the unfold directly in (B, KC, L) layout
        # (KC order = (c, ki, kj), matching F.unfold / weight.reshape).
        patches = [x_pad[:, :, i:i + s * H_out:s, j:j + s * W_out:s]
                   for i in range(k) for j in range(k)]     # each (B, C_in, H_out, W_out)
        y = jnp.stack(patches, axis=2).reshape(B, KC, L)
        w_flat = weight.reshape(C_out, KC)
        kernel = _make_unfold_kernel(B)
        in_arrays = (y, w_flat, b_col)

    out = pl.pallas_call(
        kernel,
        out_shape=jax.ShapeDtypeStruct((B, C_out, L), x.dtype),
        grid_spec=pltpu.PrefetchScalarGridSpec(
            num_scalar_prefetch=0,
            grid=(1,),  # whole problem in one step: per-step overhead dominates
            in_specs=[_full_spec(a) for a in in_arrays],
            out_specs=pl.BlockSpec((B, C_out, L), lambda g: (0, 0, 0)),
        ),
        compiler_params=pltpu.CompilerParams(
            dimension_semantics=("arbitrary",)),
    )(*in_arrays)

    # Match the PyTorch forward's return: the un-viewed (B, C_out, L) tensor.
    return out


# ----------------------------------------------------------------------------
# Pure-JAX reference (lax conv) for correctness check
# ----------------------------------------------------------------------------
def _reference_conv(x, weight, bias, config: ConvConfig):
    out = jax.lax.conv_general_dilated(
        x, weight,
        window_strides=(config.stride, config.stride),
        padding=[(config.padding, config.padding)] * 2,
        dimension_numbers=("NCHW", "OIHW", "NCHW"),
    )
    if config.bias and bias is not None:
        out = out + bias.reshape(1, -1, 1, 1)
    B, C_out = out.shape[0], out.shape[1]
    return out.reshape(B, C_out, -1)


if __name__ == "__main__":
    config = ConvConfig(in_channels=4, out_channels=8,
                        kernel_size=3, stride=1, padding=1, bias=True)

    key = jax.random.PRNGKey(0)
    k_x, k_w = jax.random.split(key)

    # Deterministic parameter init mirroring torch: randn(...)*0.01, zeros bias.
    weight = jax.random.normal(
        k_w, (config.out_channels, config.in_channels,
              config.kernel_size, config.kernel_size), jnp.float32) * 0.01
    bias = jnp.zeros((config.out_channels,), jnp.float32)

    # Small NCHW input consistent with the module.
    x = jax.random.normal(k_x, (2, 4, 16, 16), jnp.float32)

    # --- stride == 1 (fused im2col path) ---
    out = jax.block_until_ready(my_conv2d_forward(x, weight, bias, config))
    ref = _reference_conv(x, weight, bias, config)
    assert out.shape == ref.shape, (out.shape, ref.shape)
    assert jnp.allclose(out, ref, atol=1e-4, rtol=1e-4), "stride-1 path mismatch"

    # --- stride == 2 (general fallback path) ---
    config2 = ConvConfig(in_channels=4, out_channels=8,
                         kernel_size=3, stride=2, padding=1, bias=True)
    out2 = jax.block_until_ready(my_conv2d_forward(x, weight, bias, config2))
    ref2 = _reference_conv(x, weight, bias, config2)
    assert out2.shape == ref2.shape, (out2.shape, ref2.shape)
    assert jnp.allclose(out2, ref2, atol=1e-4, rtol=1e-4), "stride-2 path mismatch"

    print("KERNEL_OK")
</pallas_src>

<mosaic_0001>
module attributes {stable_mosaic.version = 11 : i64} {
  func.func @kernel(%arg0: i32, %arg1: memref<2x4x3x288xf32, #tpu.memory_space<vmem>>, %arg2: memref<9x8x4xf32, #tpu.memory_space<vmem>>, %arg3: memref<8x1xf32, #tpu.memory_space<vmem>>, %arg4: memref<2x8x256xf32, #tpu.memory_space<vmem>>) attributes {dimension_semantics = [#tpu.dimension_semantics<arbitrary>], iteration_bounds = array<i64: 1>, scalar_prefetch = 0 : i64, scratch_operands = 0 : i64, tpu.core_type = #tpu.core_type<tc>, window_params = [{pipeline_mode = #tpu.pipeline_mode<synchronous>, transform_indices = @transform_0, window_bounds = array<i64: 2, 4, 3, 288>}, {pipeline_mode = #tpu.pipeline_mode<synchronous>, transform_indices = @transform_1, window_bounds = array<i64: 9, 8, 4>}, {pipeline_mode = #tpu.pipeline_mode<synchronous>, transform_indices = @transform_2, window_bounds = array<i64: 8, 1>}, {pipeline_mode = #tpu.pipeline_mode<synchronous>, transform_indices = @transform_3, window_bounds = array<i64: 2, 8, 256>}]} {
    %c0 = arith.constant 0 : index
    %c0_0 = arith.constant 0 : index
    %c0_1 = arith.constant 0 : index
    %c0_2 = arith.constant 0 : index
    %0 = vector.load %arg1[%c0, %c0_0, %c0_1, %c0_2] : memref<2x4x3x288xf32, #tpu.memory_space<vmem>>, vector<1x4x1x256xf32>
    %1 = vector.shape_cast %0 : vector<1x4x1x256xf32> to vector<4x256xf32>
    %c0_3 = arith.constant 0 : index
    %c0_4 = arith.constant 0 : index
    %c0_5 = arith.constant 0 : index
    %2 = vector.load %arg2[%c0_3, %c0_4, %c0_5] : memref<9x8x4xf32, #tpu.memory_space<vmem>>, vector<1x8x4xf32>
    %3 = vector.shape_cast %2 : vector<1x8x4xf32> to vector<8x4xf32>
    %cst = arith.constant dense<0.000000e+00> : vector<8x256xf32>
    %4 = tpu.matmul %3, %1, %cst {dimension_numbers = #tpu.dot_dimension_numbers<[1], [0], [0], [1], [0, 0, 1, 1], [], []>} : vector<8x4xf32>, vector<4x256xf32>, vector<8x256xf32> -> vector<8x256xf32>
    %c0_6 = arith.constant 0 : index
    %c0_7 = arith.constant 0 : index
    %c1 = arith.constant 1 : index
    %c0_8 = arith.constant 0 : index
    %5 = vector.load %arg1[%c0_6, %c0_7, %c1, %c0_8] : memref<2x4x3x288xf32, #tpu.memory_space<vmem>>, vector<1x4x1x256xf32>
    %6 = vector.shape_cast %5 : vector<1x4x1x256xf32> to vector<4x256xf32>
    %c1_9 = arith.constant 1 : index
    %c0_10 = arith.constant 0 : index
    %c0_11 = arith.constant 0 : index
    %7 = vector.load %arg2[%c1_9, %c0_10, %c0_11] : memref<9x8x4xf32, #tpu.memory_space<vmem>>, vector<1x8x4xf32>
    %8 = vector.shape_cast %7 : vector<1x8x4xf32> to vector<8x4xf32>
    %cst_12 = arith.constant dense<0.000000e+00> : vector<8x256xf32>
    %9 = tpu.matmul %8, %6, %cst_12 {dimension_numbers = #tpu.dot_dimension_numbers<[1], [0], [0], [1], [0, 0, 1, 1], [], []>} : vector<8x4xf32>, vector<4x256xf32>, vector<8x256xf32> -> vector<8x256xf32>
    %10 = arith.addf %4, %9 : vector<8x256xf32>
    %c0_13 = arith.constant 0 : index
    %c0_14 = arith.constant 0 : index
    %c2 = arith.constant 2 : index
    %c0_15 = arith.constant 0 : index
    %11 = vector.load %arg1[%c0_13, %c0_14, %c2, %c0_15] : memref<2x4x3x288xf32, #tpu.memory_space<vmem>>, vector<1x4x1x256xf32>
    %12 = vector.shape_cast %11 : vector<1x4x1x256xf32> to vector<4x256xf32>
    %c2_16 = arith.constant 2 : index
    %c0_17 = arith.constant 0 : index
    %c0_18 = arith.constant 0 : index
    %13 = vector.load %arg2[%c2_16, %c0_17, %c0_18] : memref<9x8x4xf32, #tpu.memory_space<vmem>>, vector<1x8x4xf32>
    %14 = vector.shape_cast %13 : vector<1x8x4xf32> to vector<8x4xf32>
    %cst_19 = arith.constant dense<0.000000e+00> : vector<8x256xf32>
    %15 = tpu.matmul %14, %12, %cst_19 {dimension_numbers = #tpu.dot_dimension_numbers<[1], [0], [0], [1], [0, 0, 1, 1], [], []>} : vector<8x4xf32>, vector<4x256xf32>, vector<8x256xf32> -> vector<8x256xf32>
    %16 = arith.addf %10, %15 : vector<8x256xf32>
    %c0_20 = arith.constant 0 : index
    %c0_21 = arith.constant 0 : index
    %c0_22 = arith.constant 0 : index
    %c16 = arith.constant 16 : index
    %17 = vector.load %arg1[%c0_20, %c0_21, %c0_22, %c16] : memref<2x4x3x288xf32, #tpu.memory_space<vmem>>, vector<1x4x1x256xf32>
    %18 = vector.shape_cast %17 : vector<1x4x1x256xf32> to vector<4x256xf32>
    %c3 = arith.constant 3 : index
    %c0_23 = arith.constant 0 : index
    %c0_24 = arith.constant 0 : index
    %19 = vector.load %arg2[%c3, %c0_23, %c0_24] : memref<9x8x4xf32, #tpu.memory_space<vmem>>, vector<1x8x4xf32>
    %20 = vector.shape_cast %19 : vector<1x8x4xf32> to vector<8x4xf32>
    %cst_25 = arith.constant dense<0.000000e+00> : vector<8x256xf32>
    %21 = tpu.matmul %20, %18, %cst_25 {dimension_numbers = #tpu.dot_dimension_numbers<[1], [0], [0], [1], [0, 0, 1, 1], [], []>} : vector<8x4xf32>, vector<4x256xf32>, vector<8x256xf32> -> vector<8x256xf32>
    %22 = arith.addf %16, %21 : vector<8x256xf32>
    %c0_26 = arith.constant 0 : index
    %c0_27 = arith.constant 0 : index
    %c1_28 = arith.constant 1 : index
    %c16_29 = arith.constant 16 : index
    %23 = vector.load %arg1[%c0_26, %c0_27, %c1_28, %c16_29] : memref<2x4x3x288xf32, #tpu.memory_space<vmem>>, vector<1x4x1x256xf32>
    %24 = vector.shape_cast %23 : vector<1x4x1x256xf32> to vector<4x256xf32>
    %c4 = arith.constant 4 : index
    %c0_30 = arith.constant 0 : index
    %c0_31 = arith.constant 0 : index
    %25 = vector.load %arg2[%c4, %c0_30, %c0_31] : memref<9x8x4xf32, #tpu.memory_space<vmem>>, vector<1x8x4xf32>
    %26 = vector.shape_cast %25 : vector<1x8x4xf32> to vector<8x4xf32>
    %cst_32 = arith.constant dense<0.000000e+00> : vector<8x256xf32>
    %27 = tpu.matmul %26, %24, %cst_32 {dimension_numbers = #tpu.dot_dimension_numbers<[1], [0], [0], [1], [0, 0, 1, 1], [], []>} : vector<8x4xf32>, vector<4x256xf32>, vector<8x256xf32> -> vector<8x256xf32>
    %28 = arith.addf %22, %27 : vector<8x256xf32>
    %c0_33 = arith.constant 0 : index
    %c0_34 = arith.constant 0 : index
    %c2_35 = arith.constant 2 : index
    %c16_36 = arith.constant 16 : index
    %29 = vector.load %arg1[%c0_33, %c0_34, %c2_35, %c16_36] : memref<2x4x3x288xf32, #tpu.memory_space<vmem>>, vector<1x4x1x256xf32>
    %30 = vector.shape_cast %29 : vector<1x4x1x256xf32> to vector<4x256xf32>
    %c5 = arith.constant 5 : index
    %c0_37 = arith.constant 0 : index
    %c0_38 = arith.constant 0 : index
    %31 = vector.load %arg2[%c5, %c0_37, %c0_38] : memref<9x8x4xf32, #tpu.memory_space<vmem>>, vector<1x8x4xf32>
    %32 = vector.shape_cast %31 : vector<1x8x4xf32> to vector<8x4xf32>
    %cst_39 = arith.constant dense<0.000000e+00> : vector<8x256xf32>
    %33 = tpu.matmul %32, %30, %cst_39 {dimension_numbers = #tpu.dot_dimension_numbers<[1], [0], [0], [1], [0, 0, 1, 1], [], []>} : vector<8x4xf32>, vector<4x256xf32>, vector<8x256xf32> -> vector<8x256xf32>
    %34 = arith.addf %28, %33 : vector<8x256xf32>
    %c0_40 = arith.constant 0 : index
    %c0_41 = arith.constant 0 : index
    %c0_42 = arith.constant 0 : index
    %c32 = arith.constant 32 : index
    %35 = vector.load %arg1[%c0_40, %c0_41, %c0_42, %c32] : memref<2x4x3x288xf32, #tpu.memory_space<vmem>>, vector<1x4x1x256xf32>
    %36 = vector.shape_cast %35 : vector<1x4x1x256xf32> to vector<4x256xf32>
    %c6 = arith.constant 6 : index
    %c0_43 = arith.constant 0 : index
    %c0_44 = arith.constant 0 : index
    %37 = vector.load %arg2[%c6, %c0_43, %c0_44] : memref<9x8x4xf32, #tpu.memory_space<vmem>>, vector<1x8x4xf32>
    %38 = vector.shape_cast %37 : vector<1x8x4xf32> to vector<8x4xf32>
    %cst_45 = arith.constant dense<0.000000e+00> : vector<8x256xf32>
    %39 = tpu.matmul %38, %36, %cst_45 {dimension_numbers = #tpu.dot_dimension_numbers<[1], [0], [0], [1], [0, 0, 1, 1], [], []>} : vector<8x4xf32>, vector<4x256xf32>, vector<8x256xf32> -> vector<8x256xf32>
    %40 = arith.addf %34, %39 : vector<8x256xf32>
    %c0_46 = arith.constant 0 : index
    %c0_47 = arith.constant 0 : index
    %c1_48 = arith.constant 1 : index
    %c32_49 = arith.constant 32 : index
    %41 = vector.load %arg1[%c0_46, %c0_47, %c1_48, %c32_49] : memref<2x4x3x288xf32, #tpu.memory_space<vmem>>, vector<1x4x1x256xf32>
    %42 = vector.shape_cast %41 : vector<1x4x1x256xf32> to vector<4x256xf32>
    %c7 = arith.constant 7 : index
    %c0_50 = arith.constant 0 : index
    %c0_51 = arith.constant 0 : index
    %43 = vector.load %arg2[%c7, %c0_50, %c0_51] : memref<9x8x4xf32, #tpu.memory_space<vmem>>, vector<1x8x4xf32>
    %44 = vector.shape_cast %43 : vector<1x8x4xf32> to vector<8x4xf32>
    %cst_52 = arith.constant dense<0.000000e+00> : vector<8x256xf32>
    %45 = tpu.matmul %44, %42, %cst_52 {dimension_numbers = #tpu.dot_dimension_numbers<[1], [0], [0], [1], [0, 0, 1, 1], [], []>} : vector<8x4xf32>, vector<4x256xf32>, vector<8x256xf32> -> vector<8x256xf32>
    %46 = arith.addf %40, %45 : vector<8x256xf32>
    %c0_53 = arith.constant 0 : index
    %c0_54 = arith.constant 0 : index
    %c2_55 = arith.constant 2 : index
    %c32_56 = arith.constant 32 : index
    %47 = vector.load %arg1[%c0_53, %c0_54, %c2_55, %c32_56] : memref<2x4x3x288xf32, #tpu.memory_space<vmem>>, vector<1x4x1x256xf32>
    %48 = vector.shape_cast %47 : vector<1x4x1x256xf32> to vector<4x256xf32>
    %c8 = arith.constant 8 : index
    %c0_57 = arith.constant 0 : index
    %c0_58 = arith.constant 0 : index
    %49 = vector.load %arg2[%c8, %c0_57, %c0_58] : memref<9x8x4xf32, #tpu.memory_space<vmem>>, vector<1x8x4xf32>
    %50 = vector.shape_cast %49 : vector<1x8x4xf32> to vector<8x4xf32>
    %cst_59 = arith.constant dense<0.000000e+00> : vector<8x256xf32>
    %51 = tpu.matmul %50, %48, %cst_59 {dimension_numbers = #tpu.dot_dimension_numbers<[1], [0], [0], [1], [0, 0, 1, 1], [], []>} : vector<8x4xf32>, vector<4x256xf32>, vector<8x256xf32> -> vector<8x256xf32>
    %52 = arith.addf %46, %51 : vector<8x256xf32>
    %c0_60 = arith.constant 0 : index
    %c0_61 = arith.constant 0 : index
    %53 = vector.load %arg3[%c0_60, %c0_61] : memref<8x1xf32, #tpu.memory_space<vmem>>, vector<8x1xf32>
    %54 = vector.broadcast %53 : vector<8x1xf32> to vector<8x256xf32>
    %55 = arith.addf %52, %54 : vector<8x256xf32>
    %c0_62 = arith.constant 0 : index
    %c0_63 = arith.constant 0 : index
    %c0_64 = arith.constant 0 : index
    %56 = vector.load %arg4[%c0_62, %c0_63, %c0_64] : memref<2x8x256xf32, #tpu.memory_space<vmem>>, vector<1x8x256xf32>
    %57 = vector.shape_cast %56 : vector<1x8x256xf32> to vector<8x256xf32>
    %58 = vector.shape_cast %55 : vector<8x256xf32> to vector<1x8x256xf32>
    tpu.vector_store %arg4[%c0_62, %c0_63, %c0_64], %58 {strides = array<i32>} : memref<2x8x256xf32, #tpu.memory_space<vmem>>, vector<1x8x256xf32>,
    %c1_65 = arith.constant 1 : index
    %c0_66 = arith.constant 0 : index
    %c0_67 = arith.constant 0 : index
    %c0_68 = arith.constant 0 : index
    %59 = vector.load %arg1[%c1_65, %c0_66, %c0_67, %c0_68] : memref<2x4x3x288xf32, #tpu.memory_space<vmem>>, vector<1x4x1x256xf32>
    %60 = vector.shape_cast %59 : vector<1x4x1x256xf32> to vector<4x256xf32>
    %c0_69 = arith.constant 0 : index
    %c0_70 = arith.constant 0 : index
    %c0_71 = arith.constant 0 : index
    %61 = vector.load %arg2[%c0_69, %c0_70, %c0_71] : memref<9x8x4xf32, #tpu.memory_space<vmem>>, vector<1x8x4xf32>
    %62 = vector.shape_cast %61 : vector<1x8x4xf32> to vector<8x4xf32>
    %cst_72 = arith.constant dense<0.000000e+00> : vector<8x256xf32>
    %63 = tpu.matmul %62, %60, %cst_72 {dimension_numbers = #tpu.dot_dimension_numbers<[1], [0], [0], [1], [0, 0, 1, 1], [], []>} : vector<8x4xf32>, vector<4x256xf32>, vector<8x256xf32> -> vector<8x256xf32>
    %c1_73 = arith.constant 1 : index
    %c0_74 = arith.constant 0 : index
    %c1_75 = arith.constant 1 : index
    %c0_76 = arith.constant 0 : index
    %64 = vector.load %arg1[%c1_73, %c0_74, %c1_75, %c0_76] : memref<2x4x3x288xf32, #tpu.memory_space<vmem>>, vector<1x4x1x256xf32>
    %65 = vector.shape_cast %64 : vector<1x4x1x256xf32> to vector<4x256xf32>
    %c1_77 = arith.constant 1 : index
    %c0_78 = arith.constant 0 : index
    %c0_79 = arith.constant 0 : index
    %66 = vector.load %arg2[%c1_77, %c0_78, %c0_79] : memref<9x8x4xf32, #tpu.memory_space<vmem>>, vector<1x8x4xf32>
    %67 = vector.shape_cast %66 : vector<1x8x4xf32> to vector<8x4xf32>
    %cst_80 = arith.constant dense<0.000000e+00> : vector<8x256xf32>
    %68 = tpu.matmul %67, %65, %cst_80 {dimension_numbers = #tpu.dot_dimension_numbers<[1], [0], [0], [1], [0, 0, 1, 1], [], []>} : vector<8x4xf32>, vector<4x256xf32>, vector<8x256xf32> -> vector<8x256xf32>
    %69 = arith.addf %63, %68 : vector<8x256xf32>
    %c1_81 = arith.constant 1 : index
    %c0_82 = arith.constant 0 : index
    %c2_83 = arith.constant 2 : index
    %c0_84 = arith.constant 0 : index
    %70 = vector.load %arg1[%c1_81, %c0_82, %c2_83, %c0_84] : memref<2x4x3x288xf32, #tpu.memory_space<vmem>>, vector<1x4x1x256xf32>
    %71 = vector.shape_cast %70 : vector<1x4x1x256xf32> to vector<4x256xf32>
    %c2_85 = arith.constant 2 : index
    %c0_86 = arith.constant 0 : index
    %c0_87 = arith.constant 0 : index
    %72 = vector.load %arg2[%c2_85, %c0_86, %c0_87] : memref<9x8x4xf32, #tpu.memory_space<vmem>>, vector<1x8x4xf32>
    %73 = vector.shape_cast %72 : vector<1x8x4xf32> to vector<8x4xf32>
    %cst_88 = arith.constant dense<0.000000e+00> : vector<8x256xf32>
    %74 = tpu.matmul %73, %71, %cst_88 {dimension_numbers = #tpu.dot_dimension_numbers<[1], [0], [0], [1], [0, 0, 1, 1], [], []>} : vector<8x4xf32>, vector<4x256xf32>, vector<8x256xf32> -> vector<8x256xf32>
    %75 = arith.addf %69, %74 : vector<8x256xf32>
    %c1_89 = arith.constant 1 : index
    %c0_90 = arith.constant 0 : index
    %c0_91 = arith.constant 0 : index
    %c16_92 = arith.constant 16 : index
    %76 = vector.load %arg1[%c1_89, %c0_90, %c0_91, %c16_92] : memref<2x4x3x288xf32, #tpu.memory_space<vmem>>, vector<1x4x1x256xf32>
    %77 = vector.shape_cast %76 : vector<1x4x1x256xf32> to vector<4x256xf32>
    %c3_93 = arith.constant 3 : index
    %c0_94 = arith.constant 0 : index
    %c0_95 = arith.constant 0 : index
    %78 = vector.load %arg2[%c3_93, %c0_94, %c0_95] : memref<9x8x4xf32, #tpu.memory_space<vmem>>, vector<1x8x4xf32>
    %79 = vector.shape_cast %78 : vector<1x8x4xf32> to vector<8x4xf32>
    %cst_96 = arith.constant dense<0.000000e+00> : vector<8x256xf32>
    %80 = tpu.matmul %79, %77, %cst_96 {dimension_numbers = #tpu.dot_dimension_numbers<[1], [0], [0], [1], [0, 0, 1, 1], [], []>} : vector<8x4xf32>, vector<4x256xf32>, vector<8x256xf32> -> vector<8x256xf32>
    %81 = arith.addf %75, %80 : vector<8x256xf32>
    %c1_97 = arith.constant 1 : index
    %c0_98 = arith.constant 0 : index
    %c1_99 = arith.constant 1 : index
    %c16_100 = arith.constant 16 : index
    %82 = vector.load %arg1[%c1_97, %c0_98, %c1_99, %c16_100] : memref<2x4x3x288xf32, #tpu.memory_space<vmem>>, vector<1x4x1x256xf32>
    %83 = vector.shape_cast %82 : vector<1x4x1x256xf32> to vector<4x256xf32>
    %c4_101 = arith.constant 4 : index
    %c0_102 = arith.constant 0 : index
    %c0_103 = arith.constant 0 : index
    %84 = vector.load %arg2[%c4_101, %c0_102, %c0_103] : memref<9x8x4xf32, #tpu.memory_space<vmem>>, vector<1x8x4xf32>
    %85 = vector.shape_cast %84 : vector<1x8x4xf32> to vector<8x4xf32>
    %cst_104 = arith.constant dense<0.000000e+00> : vector<8x256xf32>
    %86 = tpu.matmul %85, %83, %cst_104 {dimension_numbers = #tpu.dot_dimension_numbers<[1], [0], [0], [1], [0, 0, 1, 1], [], []>} : vector<8x4xf32>, vector<4x256xf32>, vector<8x256xf32> -> vector<8x256xf32>
    %87 = arith.addf %81, %86 : vector<8x256xf32>
    %c1_105 = arith.constant 1 : index
    %c0_106 = arith.constant 0 : index
    %c2_107 = arith.constant 2 : index
    %c16_108 = arith.constant 16 : index
    %88 = vector.load %arg1[%c1_105, %c0_106, %c2_107, %c16_108] : memref<2x4x3x288xf32, #tpu.memory_space<vmem>>, vector<1x4x1x256xf32>
    %89 = vector.shape_cast %88 : vector<1x4x1x256xf32> to vector<4x256xf32>
    %c5_109 = arith.constant 5 : index
    %c0_110 = arith.constant 0 : index
    %c0_111 = arith.constant 0 : index
    %90 = vector.load %arg2[%c5_109, %c0_110, %c0_111] : memref<9x8x4xf32, #tpu.memory_space<vmem>>, vector<1x8x4xf32>
    %91 = vector.shape_cast %90 : vector<1x8x4xf32> to vector<8x4xf32>
    %cst_112 = arith.constant dense<0.000000e+00> : vector<8x256xf32>
    %92 = tpu.matmul %91, %89, %cst_112 {dimension_numbers = #tpu.dot_dimension_numbers<[1], [0], [0], [1], [0, 0, 1, 1], [], []>} : vector<8x4xf32>, vector<4x256xf32>, vector<8x256xf32> -> vector<8x256xf32>
    %93 = arith.addf %87, %92 : vector<8x256xf32>
    %c1_113 = arith.constant 1 : index
    %c0_114 = arith.constant 0 : index
    %c0_115 = arith.constant 0 : index
    %c32_116 = arith.constant 32 : index
    %94 = vector.load %arg1[%c1_113, %c0_114, %c0_115, %c32_116] : memref<2x4x3x288xf32, #tpu.memory_space<vmem>>, vector<1x4x1x256xf32>
    %95 = vector.shape_cast %94 : vector<1x4x1x256xf32> to vector<4x256xf32>
    %c6_117 = arith.constant 6 : index
    %c0_118 = arith.constant 0 : index
    %c0_119 = arith.constant 0 : index
    %96 = vector.load %arg2[%c6_117, %c0_118, %c0_119] : memref<9x8x4xf32, #tpu.memory_space<vmem>>, vector<1x8x4xf32>
    %97 = vector.shape_cast %96 : vector<1x8x4xf32> to vector<8x4xf32>
    %cst_120 = arith.constant dense<0.000000e+00> : vector<8x256xf32>
    %98 = tpu.matmul %97, %95, %cst_120 {dimension_numbers = #tpu.dot_dimension_numbers<[1], [0], [0], [1], [0, 0, 1, 1], [], []>} : vector<8x4xf32>, vector<4x256xf32>, vector<8x256xf32> -> vector<8x256xf32>
    %99 = arith.addf %93, %98 : vector<8x256xf32>
    %c1_121 = arith.constant 1 : index
    %c0_122 = arith.constant 0 : index
    %c1_123 = arith.constant 1 : index
    %c32_124 = arith.constant 32 : index
    %100 = vector.load %arg1[%c1_121, %c0_122, %c1_123, %c32_124] : memref<2x4x3x288xf32, #tpu.memory_space<vmem>>, vector<1x4x1x256xf32>
    %101 = vector.shape_cast %100 : vector<1x4x1x256xf32> to vector<4x256xf32>
    %c7_125 = arith.constant 7 : index
    %c0_126 = arith.constant 0 : index
    %c0_127 = arith.constant 0 : index
    %102 = vector.load %arg2[%c7_125, %c0_126, %c0_127] : memref<9x8x4xf32, #tpu.memory_space<vmem>>, vector<1x8x4xf32>
    %103 = vector.shape_cast %102 : vector<1x8x4xf32> to vector<8x4xf32>
    %cst_128 = arith.constant dense<0.000000e+00> : vector<8x256xf32>
    %104 = tpu.matmul %103, %101, %cst_128 {dimension_numbers = #tpu.dot_dimension_numbers<[1], [0], [0], [1], [0, 0, 1, 1], [], []>} : vector<8x4xf32>, vector<4x256xf32>, vector<8x256xf32> -> vector<8x256xf32>
    %105 = arith.addf %99, %104 : vector<8x256xf32>
    %c1_129 = arith.constant 1 : index
    %c0_130 = arith.constant 0 : index
    %c2_131 = arith.constant 2 : index
    %c32_132 = arith.constant 32 : index
    %106 = vector.load %arg1[%c1_129, %c0_130, %c2_131, %c32_132] : memref<2x4x3x288xf32, #tpu.memory_space<vmem>>, vector<1x4x1x256xf32>
    %107 = vector.shape_cast %106 : vector<1x4x1x256xf32> to vector<4x256xf32>
    %c8_133 = arith.constant 8 : index
    %c0_134 = arith.constant 0 : index
    %c0_135 = arith.constant 0 : index
    %108 = vector.load %arg2[%c8_133, %c0_134, %c0_135] : memref<9x8x4xf32, #tpu.memory_space<vmem>>, vector<1x8x4xf32>
    %109 = vector.shape_cast %108 : vector<1x8x4xf32> to vector<8x4xf32>
    %cst_136 = arith.constant dense<0.000000e+00> : vector<8x256xf32>
    %110 = tpu.matmul %109, %107, %cst_136 {dimension_numbers = #tpu.dot_dimension_numbers<[1], [0], [0], [1], [0, 0, 1, 1], [], []>} : vector<8x4xf32>, vector<4x256xf32>, vector<8x256xf32> -> vector<8x256xf32>
    %111 = arith.addf %105, %110 : vector<8x256xf32>
    %c0_137 = arith.constant 0 : index
    %c0_138 = arith.constant 0 : index
    %112 = vector.load %arg3[%c0_137, %c0_138] : memref<8x1xf32, #tpu.memory_space<vmem>>, vector<8x1xf32>
    %113 = vector.broadcast %112 : vector<8x1xf32> to vector<8x256xf32>
    %114 = arith.addf %111, %113 : vector<8x256xf32>
    %c1_139 = arith.constant 1 : index
    %c0_140 = arith.constant 0 : index
    %c0_141 = arith.constant 0 : index
    %115 = vector.load %arg4[%c1_139, %c0_140, %c0_141] : memref<2x8x256xf32, #tpu.memory_space<vmem>>, vector<1x8x256xf32>
    %116 = vector.shape_cast %115 : vector<1x8x256xf32> to vector<8x256xf32>
    %117 = vector.shape_cast %114 : vector<8x256xf32> to vector<1x8x256xf32>
    tpu.vector_store %arg4[%c1_139, %c0_140, %c0_141], %117 {strides = array<i32>} : memref<2x8x256xf32, #tpu.memory_space<vmem>>, vector<1x8x256xf32>,
    return
  }
  func.func @transform_0(%arg0: i32) -> (i32, i32, i32, i32) {
    %c0_i32 = arith.constant 0 : i32
    %c0_i32_0 = arith.constant 0 : i32
    %c0_i32_1 = arith.constant 0 : i32
    %c0_i32_2 = arith.constant 0 : i32
    %c0_i32_3 = arith.constant 0 : i32
    return %c0_i32, %c0_i32_0, %c0_i32_1, %c0_i32_2 : i32, i32, i32, i32
  }
  func.func @transform_1(%arg0: i32) -> (i32, i32, i32) {
    %c0_i32 = arith.constant 0 : i32
    %c0_i32_0 = arith.constant 0 : i32
    %c0_i32_1 = arith.constant 0 : i32
    %c0_i32_2 = arith.constant 0 : i32
    return %c0_i32, %c0_i32_0, %c0_i32_1 : i32, i32, i32
  }
  func.func @transform_2(%arg0: i32) -> (i32, i32) {
    %c0_i32 = arith.constant 0 : i32
    %c0_i32_0 = arith.constant 0 : i32
    %c0_i32_1 = arith.constant 0 : i32
    return %c0_i32, %c0_i32_0 : i32, i32
  }
  func.func @transform_3(%arg0: i32) -> (i32, i32, i32) {
    %c0_i32 = arith.constant 0 : i32
    %c0_i32_0 = arith.constant 0 : i32
    %c0_i32_1 = arith.constant 0 : i32
    %c0_i32_2 = arith.constant 0 : i32
    return %c0_i32, %c0_i32_0, %c0_i32_1 : i32, i32, i32
  }
}

</mosaic_0001>

<bundles_post_ra>
// kernel: my_conv2d_forward.1
= control target key start
LH: loop header
LB: loop body
LE: loop exit
PB: predicated region body
PF: predicated region fallthrough
CT: control target
= control target key end

     0   :  { %v42_v0 = vlaneseq  ;;  %v2581_v2 = vmov 1966171168   ;;  %s2582_s6 = smov 112   ;;  %vm73_vm0 = vcmask 1043456   ;;  %vm69_vm1 = vcmask 31744   ;;  %s3144_s0 = inlined_call_operand.vmem [shape: f32[2,4,3,288], index: 0, kind: input, shape index: {}]   ;;  %s3145_s1 = inlined_call_operand.vmem [shape: f32[9,8,4], index: 1, kind: input, shape index: {}]   ;;  %s3146_s2 = inlined_call_operand.vmem [shape: f32[8,1], index: 2, kind: input, shape index: {}]   ;;  %s3147_s3 = inlined_call_operand.hbm [shape: f32[2,8,256], index: 3, kind: output, shape index: {}]  }
   0x1   :  { %v2467_v1 = vld [vmem:[%s3144_s0 + $0x30] ss:$4 sm:$0x7]  ;;  %v40_v3 = vunpack.c.l.s4 %v2581_v2  ;;  %v2468_v4 = vld [vmem:[%s3144_s0 + $0x3c] ss:$4 sm:$0x7] }
   0x2   :  { %v2469_v5 = vld [vmem:[%s3144_s0 + $0x48] ss:$4 sm:$0x7]  ;;  %v43_v6 = vshrl.u32 %v42_v0, 7  ;;  %v1567_v9 = vcombine.low %v2467_v1, %v2468_v4 }
   0x3   :  { %v2470_v7 = vld [vmem:[%s3144_s0 + $0x54] ss:$4 sm:$0x7]  ;;  %v41_v8 = vunpack.c.0.s8 %v40_v3  ;;  %v389_v11 = vld [vmem:[%s3144_s0] ss:$4 sm:$0x7] }
   0x4   :  { %v1568_v10 = vcombine.low %v2469_v5, %v2470_v7  ;;  %v2398_v12 = vld [vmem:[%s3144_s0 + $0xc] ss:$4 sm:$0x7]  ;;  %v2399_v13 = vld [vmem:[%s3144_s0 + $0x18] ss:$4 sm:$0x7] }
   0x5   :  { %v2400_v14 = vld [vmem:[%s3144_s0 + $0x24] ss:$4 sm:$0x7]  ;;  %v399_v15 = vcombine.low %v389_v11, %v2398_v12  ;;  %v2633_v16 = vsub.s32 %v41_v8, %v43_v6  ;;  %v2405_v18 = vld [vmem:[%s3144_s0 + $0x1] ss:$4 sm:$0x7] }
   0x6   :  { %v400_v17 = vcombine.low %v2399_v13, %v2400_v14  ;;  %v2406_v19 = vld [vmem:[%s3144_s0 + $0xd] ss:$4 sm:$0x7]  ;;  %v2407_v20 = vld [vmem:[%s3144_s0 + $0x19] ss:$4 sm:$0x7] }
   0x7   :  { %v2408_v21 = vld [vmem:[%s3144_s0 + $0x25] ss:$4 sm:$0x7]  ;;  %v531_v22 = vcombine.low %v2405_v18, %v2406_v19  ;;  %v1575_v23 = vrot.slane %v1567_v9, %v2633_v16  ;;  %v1582_v24 = vrot.slane %v1568_v10, %v2633_v16  ;;  %v407_v25 = vrot.slane %v399_v15, %v2633_v16  ;;  %v2475_v27 = vld [vmem:[%s3144_s0 + $0x31] ss:$4 sm:$0x7] }
   0x8   :  { %v414_v26 = vrot.slane %v400_v17, %v2633_v16  ;;  %v2476_v28 = vld [vmem:[%s3144_s0 + $0x3d] ss:$4 sm:$0x7]  ;;  %v532_v29 = vcombine.low %v2407_v20, %v2408_v21  ;;  %v2477_v31 = vld [vmem:[%s3144_s0 + $0x49] ss:$4 sm:$0x7] }
   0x9   :  { %v539_v30 = vrot.slane %v531_v22, %v2633_v16  ;;  %v2478_v32 = vld [vmem:[%s3144_s0 + $0x55] ss:$4 sm:$0x7]  ;;  %v1697_v33 = vcombine.low %v2475_v27, %v2476_v28  ;;  %v1584_v34 = vcombine.high %v1575_v23, %v1582_v24  ;;  %v1583_v36 = vcombine.low %v1575_v23, %v1582_v24  ;;  %v2413_v40 = vld [vmem:[%s3144_s0 + $0x2] ss:$4 sm:$0x7] }
   0xa   :  { %v416_v35 = vcombine.high %v407_v25, %v414_v26  ;;  %v415_v37 = vcombine.low %v407_v25, %v414_v26  ;;  %v546_v38 = vrot.slane %v532_v29, %v2633_v16  ;;  %v1698_v39 = vcombine.low %v2477_v31, %v2478_v32  ;;  %v2414_v41 = vld [vmem:[%s3144_s0 + $0xe] ss:$4 sm:$0x7]  ;;  %v2415_v42 = vld [vmem:[%s3144_s0 + $0x1a] ss:$4 sm:$0x7] }
   0xb   :  { %v2416_v43 = vld [vmem:[%s3144_s0 + $0x26] ss:$4 sm:$0x7]  ;;  %v1598_v44 = vrot.slane %v1584_v34, %v2633_v16  ;;  %v2483_v46 = vld [vmem:[%s3144_s0 + $0x32] ss:$4 sm:$0x7]  ;;  %v1705_v50 = vrot.slane %v1697_v33, %v2633_v16  ;;  %v1591_v54 = vrot.slane %v1583_v36, %v2633_v16  ;;  %v662_v61 = vcombine.low %v2413_v40, %v2414_v41 }
   0xc   :  { %v430_v45 = vrot.slane %v416_v35, %v2633_v16  ;;  %v2484_v47 = vld [vmem:[%s3144_s0 + $0x3e] ss:$4 sm:$0x7]  ;;  %v548_v48 = vcombine.high %v539_v30, %v546_v38  ;;  %v547_v49 = vcombine.low %v539_v30, %v546_v38  ;;  %v1712_v51 = vrot.slane %v1698_v39, %v2633_v16  ;;  %v2485_v52 = vld [vmem:[%s3144_s0 + $0x4a] ss:$4 sm:$0x7] }
   0xd   :  { %v2486_v53 = vld [vmem:[%s3144_s0 + $0x56] ss:$4 sm:$0x7]  ;;  %1602 = vrot.lane.b32.xlu1 %v1598_v44, %s2582_s6  ;;  %v423_v55 = vrot.slane %v415_v37, %v2633_v16  ;;  %v783_v56 = vld [vmem:[%s3144_s0] ss:$4 sm:$0x7]  ;;  %v1599_v60 = vcombine.high %v1591_v54, %v1591_v54  ;;  %v663_v62 = vcombine.low %v2415_v42, %v2416_v43  ;;  %v1827_v2 = vcombine.low %v2483_v46, %v2484_v47 }
   0xe   :  { %434 = vrot.lane.b32.xlu0 %v430_v45, %s2582_s6  ;;  %v2421_v57 = vld [vmem:[%s3144_s0 + $0xc] ss:$4 sm:$0x7]  ;;  %v2422_v58 = vld [vmem:[%s3144_s0 + $0x18] ss:$4 sm:$0x7]  ;;  %v562_v63 = vrot.slane %v548_v48, %v2633_v16  ;;  %v2711_v0 = vrot.slane %v547_v49, %v2633_v16  ;;  %v1713_v1 = vcombine.low %v1705_v50, %v1712_v51  ;;  %v1828_v3 = vcombine.low %v2485_v52, %v2486_v53 }
   0xf   :  { %v2423_v59 = vld [vmem:[%s3144_s0 + $0x24] ss:$4 sm:$0x7]  ;;  %v793_v4 = vcombine.low %v783_v56, %v2421_v57  ;;  %v431_v6 = vcombine.high %v423_v55, %v423_v55  ;;  %v670_v7 = vrot.slane %v662_v61, %v2633_v16  ;;  %v677_v8 = vrot.slane %v663_v62, %v2633_v16  ;;  %v2491_v9 = vld [vmem:[%s3144_s0 + $0x30] ss:$4 sm:$0x7] }
  0x10   :  { %v794_v5 = vcombine.low %v2422_v58, %v2423_v59  ;;  %v2492_v10 = vld [vmem:[%s3144_s0 + $0x3c] ss:$4 sm:$0x7]  ;;  %v563_v11 = vcombine.high %v2711_v0, %v2711_v0  ;;  %v1721_v12 = vrot.slane %v1713_v1, %v2633_v16  ;;  %v1714_v13 = vcombine.high %v1705_v50, %v1712_v51  ;;  %v2493_v15 = vld [vmem:[%s3144_s0 + $0x48] ss:$4 sm:$0x7] }
  0x11   :  { %1600 = vrot.lane.b32.xlu1 %v1591_v54, %s2582_s6  ;;  %v1835_v14 = vrot.slane %v1827_v2, %v2633_v16  ;;  %v2494_v17 = vld [vmem:[%s3144_s0 + $0x54] ss:$4 sm:$0x7]  ;;  %v1842_v18 = vrot.slane %v1828_v3, %v2633_v16  ;;  %v801_v19 = vrot.slane %v793_v4, %v2633_v16  ;;  %v678_v21 = vcombine.low %v670_v7, %v677_v8  ;;  %v2428_v33 = vld [vmem:[%s3144_s0 + $0x1] ss:$4 sm:$0x7] }
  0x12   :  { %432 = vrot.lane.b32.xlu0 %v423_v55, %s2582_s6  ;;  %v808_v20 = vrot.slane %v794_v5, %v2633_v16  ;;  %v1957_v22 = vcombine.low %v2491_v9, %v2492_v10  ;;  %v1958_v23 = vcombine.low %v2493_v15, %v2494_v17  ;;  %v1728_v24 = vrot.slane %v1714_v13, %v2633_v16  ;;  %v2429_v34 = vld [vmem:[%s3144_s0 + $0xd] ss:$4 sm:$0x7]  ;;  %v2449_v36 = vld [vmem:[%s3144_s0 + $0x3d] ss:$4 sm:$0x3] }
  0x13   :  { %v1729_v25 = vcombine.high %v1721_v12, %v1721_v12  ;;  %v1843_v26 = vcombine.low %v1835_v14, %v1842_v18  ;;  %v679_v28 = vcombine.high %v670_v7, %v677_v8  ;;  %v2742_v29 = vrot.slane %v678_v21, %v2633_v16  ;;  %v2448_v35 = vld [vmem:[%s3144_s0 + $0x31] ss:$4 sm:$0x3]  ;;  %v2765_v38 = vld [vmem:[%s3144_s0 + $0x19] ss:$4 sm:$0x7] }
  0x14   :  { %v809_v27 = vcombine.low %v801_v19, %v808_v20  ;;  %v1844_v30 = vcombine.high %v1835_v14, %v1842_v18  ;;  %v2745_v31 = vrot.slane %v1957_v22, %v2633_v16  ;;  %v2748_v32 = vrot.slane %v1958_v23, %v2633_v16  ;;  %v2431_v39 = vld [vmem:[%s3144_s0 + $0x25] ss:$4 sm:$0x7]  ;;  %v2451_v41 = vld [vmem:[%s3144_s0 + $0x55] ss:$4 sm:$0x3] }
  0x15   :  { %1604 = vrot.lane.b32.xlu1 %v1599_v60, %s2582_s6  ;;  %v810_v37 = vcombine.high %v801_v19, %v808_v20  ;;  %v2450_v40 = vld [vmem:[%s3144_s0 + $0x49] ss:$4 sm:$0x3]  ;;  %v2779_v42 = vrot.slane %v1843_v26, %v2633_v16  ;;  %v2787_v44 = vld [vmem:[%s3144_s0 + $0x31] ss:$4 sm:$0x7]  ;;  %v693_v48 = vrot.slane %v679_v28, %v2633_v16  ;;  %v694_v54 = vcombine.high %v2742_v29, %v2742_v29 }
  0x16   :  { %566 = vrot.lane.b32.xlu0 %v562_v63, %s2582_s6  ;;  %v2782_v43 = vrot.slane %v809_v27, %v2633_v16  ;;  %v2792_v45 = vld [vmem:[%s3144_s0 + $0x3d] ss:$4 sm:$0x7]  ;;  %v2380_v47 = vld [vmem:[%s3144_s0 + $0xd] ss:$4 sm:$0x3]  ;;  %v1858_v55 = vrot.slane %v1844_v30, %v2633_v16  ;;  %v1973_v56 = vcombine.low %v2745_v31, %v2748_v32  ;;  %v1209_v57 = vcombine.low %v2448_v35, %v2449_v36 }
  0x17   :  { %v2379_v46 = vld [vmem:[%s3144_s0 + $0x1] ss:$4 sm:$0x3]  ;;  %v2804_v49 = vld [vmem:[%s3144_s0 + $0x49] ss:$4 sm:$0x7]  ;;  %v2831_v60 = vrot.slane %v810_v37, %v2633_v16  ;;  %v1974_v61 = vcombine.high %v2745_v31, %v2748_v32  ;;  %v925_v62 = vcombine.low %v2428_v33, %v2429_v34  ;;  %v1210_v63 = vcombine.low %v2450_v40, %v2451_v41 }
  0x18   :  { %v2809_v50 = vld [vmem:[%s3144_s0 + $0x55] ss:$4 sm:$0x7]  ;;  %v2583_v51 = vmov 0.0   ;;  %v1859_v3 = vcombine.high %v2779_v42, %v2779_v42  ;;  %v825_v4 = vcombine.high %v2782_v43, %v2782_v43  ;;  %v926_v5 = vcombine.low %v2765_v38, %v2431_v39 }
  0x19   :  { %568 = vrot.lane.b32.xlu1 %v563_v11, %s2582_s6  ;;  %1312 = vmatprep.mubr.f32.mxu1 %v2583_v51  ;;  %v2381_v52 = vld [vmem:[%s3144_s0 + $0x19] ss:$4 sm:$0x3]  ;;  %v2382_v53 = vld [vmem:[%s3144_s0 + $0x25] ss:$4 sm:$0x3] }
  0x1a   :  { %436 = vrot.lane.b32.xlu0 %v431_v6, %s2582_s6  ;;  %142 = vmatprep.mubr.f32.mxu0 %v2583_v51  ;;  %v2444_v58 = vld [vmem:[%s3144_s0 + $0x30] ss:$4 sm:$0x3]  ;;  %v2445_v59 = vld [vmem:[%s3144_s0 + $0x3c] ss:$4 sm:$0x3] }
  0x1b   :  { %v2446_v1 = vld [vmem:[%s3144_s0 + $0x48] ss:$4 sm:$0x3]  ;;  %v2447_v2 = vld [vmem:[%s3144_s0 + $0x54] ss:$4 sm:$0x3] }
  0x1c   :  { %v15_v6 = vld [vmem:[%s3144_s0] ss:$4 sm:$0x3]  ;;  %v2376_v7 = vld [vmem:[%s3144_s0 + $0xc] ss:$4 sm:$0x3] }
  0x1d   :  { %1734 = vrot.lane.b32.xlu1 %v1729_v25, %s2582_s6 }
  0x1e   :  { %1732 = vrot.lane.b32.xlu0 %v1728_v24, %s2582_s6 }
  0x21   :  { %1730 = vrot.lane.b32.xlu1 %v1721_v12, %s2582_s6 }
  0x22   :  { %564 = vrot.lane.b32.xlu0 %v2711_v0, %s2582_s6 }
  0x23   :  { %8 = vsyncpa [#allocation3], 0  ;;  %v2087_v0 = vcombine.low %v2787_v44, %v2792_v45  ;;  %v1217_v8 = vrot.slane %v1209_v57, %v2633_v16  ;;  %v1224_v9 = vrot.slane %v1210_v63, %v2633_v16  ;;  %v37_v10 = vcombine.low %v2379_v46, %v2380_v47  ;;  %v2377_v11 = vld [vmem:[%s3144_s0 + $0x18] ss:$4 sm:$0x3]  ;;  %v2452_v38 = vld [vmem:[%s3145_s1 + $0x8] sm:$0xff] }
  0x24   :  { %v2378_v12 = vld [vmem:[%s3144_s0 + $0x24] ss:$4 sm:$0x3]  ;;  %v2866_v13 = vrot.slane %v1973_v56, %v2633_v16  ;;  %v2088_v14 = vcombine.low %v2804_v49, %v2809_v50  ;;  %v38_v15 = vcombine.low %v2381_v52, %v2382_v53  ;;  %v1323_v17 = vcombine.low %v2444_v58, %v2445_v59  ;;  %v2459_v18 = vld [vmem:[%s3144_s0 + $0x32] ss:$4 sm:$0x3] }
  0x25   :  { %v2460_v19 = vld [vmem:[%s3144_s0 + $0x3e] ss:$4 sm:$0x3]  ;;  %v2877_v20 = vrot.slane %v925_v62, %v2633_v16  ;;  %v1226_v21 = vcombine.high %v1217_v8, %v1224_v9  ;;  %v1225_v22 = vcombine.low %v1217_v8, %v1224_v9  ;;  %v45_v23 = vrot.slane %v37_v10, %v2633_v16  ;;  %v2461_v24 = vld [vmem:[%s3144_s0 + $0x4a] ss:$4 sm:$0x3]  ;;  %699 = vrot.lane.b32.xlu1 %v694_v54, %s2582_s6 }
  0x26   :  { %v2462_v25 = vld [vmem:[%s3144_s0 + $0x56] ss:$4 sm:$0x3]  ;;  %697 = vrot.lane.b32.xlu0 %v693_v48, %s2582_s6  ;;  %v2889_v26 = vrot.slane %v926_v5, %v2633_v16  ;;  %v52_v27 = vrot.slane %v38_v15, %v2633_v16  ;;  %v1324_v28 = vcombine.low %v2446_v1, %v2447_v2  ;;  %v2390_v30 = vld [vmem:[%s3144_s0 + $0x2] ss:$4 sm:$0x3]  ;;  %v1331_v36 = vrot.slane %v1323_v17, %v2633_v16 }
  0x27   :  { %v2391_v33 = vld [vmem:[%s3144_s0 + $0xe] ss:$4 sm:$0x3]  ;;  %v1240_v34 = vrot.slane %v1226_v21, %v2633_v16  ;;  %v1233_v35 = vrot.slane %v1225_v22, %v2633_v16  ;;  %v153_v37 = vcombine.low %v15_v6, %v2376_v7  ;;  %v154_v46 = vcombine.low %v2377_v11, %v2378_v12  ;;  %v2392_v53 = vld [vmem:[%s3144_s0 + $0x1a] ss:$4 sm:$0x3] }
  0x28   :  { %v54_v39 = vcombine.high %v45_v23, %v52_v27  ;;  %v53_v40 = vcombine.low %v45_v23, %v52_v27  ;;  %v1338_v41 = vrot.slane %v1324_v28, %v2633_v16  ;;  %v1446_v48 = vcombine.low %v2459_v18, %v2460_v19  ;;  %v2393_v54 = vld [vmem:[%s3144_s0 + $0x26] ss:$4 sm:$0x3]  ;;  %v2437_v21 = vld [vmem:[%s3144_s0 + $0xe] ss:$4 sm:$0x7] }
  0x29   :  { %2453 = vmatprep.subr.msk.mxu1 %vm73_vm0, %v1240_v34  ;;  %v161_v47 = vrot.slane %v153_v37, %v2633_v16  ;;  %v1447_v52 = vcombine.low %v2461_v24, %v2462_v25  ;;  %v277_v56 = vcombine.low %v2390_v30, %v2391_v33  ;;  %1864 = vrot.lane.b32.xlu1 %v1859_v3, %s2582_s6  ;;  %v2436_v17 = vld [vmem:[%s3144_s0 + $0x2] ss:$4 sm:$0x7]  ;;  %s2584_s16 = smov 96   ;;  %v2463_v37 = vld [vmem:[%s3145_s1 + $0x10] sm:$0xff]  ;;  %vm438_vm2 = vcmask 916480  }
  0x2a   :  { %1862 = vrot.lane.b32.xlu0 %v1858_v55, %s2582_s6  ;;  %v68_v57 = vrot.slane %v54_v39, %v2633_v16  ;;  %v61_v58 = vrot.slane %v53_v40, %v2633_v16  ;;  %v1339_v59 = vcombine.low %v1331_v36, %v1338_v41  ;;  %2454 = vmatpush1.msk.msra.mxu1 %vm73_vm0, %v1233_v35  ;;  %v1195_v22 = vld [vmem:[%s3145_s1] sm:$0xff]  ;;  %v2509_v30 = vld [vmem:[%s3144_s0 + $0x4a] ss:$4 sm:$0x7]  ;;  %vm832_vm3 = vcmask 785408  }
  0x2b   :  { %v1340_v62 = vcombine.high %v1331_v36, %v1338_v41  ;;  %v168_v63 = vrot.slane %v154_v46, %v2633_v16  ;;  %v1454_v1 = vrot.slane %v1446_v48, %v2633_v16  ;;  %v1461_v2 = vrot.slane %v1447_v52, %v2633_v16  ;;  %2455 = vmatmul.mubr.msk.f32.vlgmr.msra.gmra.mrb[0].mxu1 %vm69_vm1, %v2452_v38  ;;  %v2438_v45 = vld [vmem:[%s3144_s0 + $0x1a] ss:$4 sm:$0x7] }
  0x2c   :  { %2384 = vmatprep.subr.msk.mxu0 %vm73_vm0, %v68_v57  ;;  %v1347_v55 = vrot.slane %v1339_v59, %v2633_v16  ;;  %v278_v3 = vcombine.low %v2392_v53, %v2393_v54  ;;  %v285_v5 = vrot.slane %v277_v56, %v2633_v16  ;;  %1426 = vmatprep.mubr.f32.mxu1 %v2583_v51  ;;  %v2510_v33 = vld [vmem:[%s3144_s0 + $0x56] ss:$4 sm:$0x7]  ;;  %v2585_v59 = vmov 0  }
  0x2d   :  { %2385 = vmatpush1.msk.msra.mxu0 %vm73_vm0, %v61_v58  ;;  %v1354_v6 = vrot.slane %v1340_v62, %v2633_v16  ;;  %v169_v7 = vcombine.low %v161_v47, %v168_v63  ;;  %v170_v8 = vcombine.high %v161_v47, %v168_v63  ;;  %1860 = vrot.lane.b32.xlu1 %v2779_v42, %s2582_s6 }
  0x2e   :  { %695 = vrot.lane.b32.xlu0 %v2742_v29, %s2582_s6  ;;  %v1462_v9 = vcombine.low %v1454_v1, %v1461_v2  ;;  %v1463_v10 = vcombine.high %v1454_v1, %v1461_v2  ;;  %v292_v11 = vrot.slane %v278_v3, %v2633_v16  ;;  %2386 = vmatmul.mubr.msk.f32.vlgmr.msra.gmra.mrb[0].mxu0 %vm69_vm1, %v2452_v38  ;;  %v2338_v1 = vld [vmem:[%s3146_s2] sm:$0xff] }
  0x2f   :  { %2456 = vmatprep.subr.msk.mxu1 %vm73_vm0, %v1354_v6  ;;  %v184_v12 = vrot.slane %v170_v8, %v2633_v16  ;;  %v177_v15 = vrot.slane %v169_v7, %v2633_v16  ;;  %256 = vmatprep.mubr.f32.mxu0 %v2583_v51  ;;  %v1988_v18 = vrot.slane %v1974_v61, %v2633_v16  ;;  %v2439_v61 = vld [vmem:[%s3144_s0 + $0x26] ss:$4 sm:$0x7]  ;;  %v2401_v8 = vld [vmem:[%s3145_s1 + $0x18] sm:$0xff] }
  0x30   :  { %2457 = vmatpush1.msk.msra.mxu1 %vm73_vm0, %v1347_v55  ;;  %v1477_v29 = vrot.slane %v1463_v10, %v2633_v16  ;;  %v293_v42 = vcombine.low %v285_v5, %v292_v11  ;;  %v2095_v19 = vrot.slane %v2087_v0, %v2633_v16  ;;  %v1470_v23 = vrot.slane %v1462_v9, %v2633_v16  ;;  %v2507_v0 = vld [vmem:[%s3144_s0 + $0x32] ss:$4 sm:$0x7] }
  0x31   :  { %2387 = vmatprep.subr.msk.mxu0 %vm73_vm0, %v184_v12  ;;  %v294_v24 = vcombine.high %v285_v5, %v292_v11  ;;  %830 = vrot.lane.b32.xlu1 %v825_v4, %s2584_s16  ;;  %v1989_v31 = vcombine.high %v2866_v13, %v2866_v13  ;;  %v941_v32 = vcombine.low %v2877_v20, %v2889_v26 }
  0x32   :  { %828 = vrot.lane.b32.xlu0 %v2831_v60, %s2584_s16  ;;  %v2102_v44 = vrot.slane %v2088_v14, %v2633_v16  ;;  %2388 = vmatpush1.msk.msra.mxu0 %vm73_vm0, %v177_v15  ;;  %v301_v4 = vrot.slane %v293_v42, %v2633_v16  ;;  %v1056_v49 = vcombine.low %v2436_v17, %v2437_v21  ;;  %v2508_v14 = vld [vmem:[%s3144_s0 + $0x3e] ss:$4 sm:$0x7] }
  0x33   :  { %2464 = vmatprep.subr.msk.mxu1 %vm73_vm0, %v1477_v29  ;;  %v308_v60 = vrot.slane %v294_v24, %v2633_v16  ;;  %2458 = vmatmul.mubr.msk.f32.vlgmr.msra.gmra.mrb[0].mxu1 %vm69_vm1, %v1195_v22  ;;  %v1057_v50 = vcombine.low %v2438_v45, %v2439_v61  ;;  %v949_v25 = vrot.slane %v941_v32, %v2633_v16 }
  0x34   :  { %2465 = vmatpush1.msk.msra.mxu1 %vm73_vm0, %v1470_v23  ;;  %1549 = vmatprep.mubr.f32.mxu1 %v2583_v51  ;;  %v942_v27 = vcombine.high %v2877_v20, %v2889_v26  ;;  %v2103_v28 = vcombine.low %v2095_v19, %v2102_v44  ;;  %v2217_v34 = vcombine.low %v2507_v0, %v2508_v14 }
  0x35   :  { %1994 = vrot.lane.b32.xlu1 %v1989_v31, %s2584_s16  ;;  %2395 = vmatprep.subr.msk.mxu0 %vm73_vm0, %v308_v60  ;;  %v2104_v35 = vcombine.high %v2095_v19, %v2102_v44  ;;  %v1064_v20 = vrot.slane %v1056_v49, %v2633_v16  ;;  %v1071_v26 = vrot.slane %v1057_v50, %v2633_v16  ;;  %v2417_v50 = vld [vmem:[%s3145_s1 + $0x28] sm:$0xff] }
  0x36   :  { %1992 = vrot.lane.b32.xlu0 %v1988_v18, %s2584_s16  ;;  %2389 = vmatmul.mubr.msk.f32.vlgmr.msra.gmra.mrb[0].mxu0 %vm69_vm1, %v1195_v22  ;;  %v2218_v36 = vcombine.low %v2509_v30, %v2510_v33  ;;  %v957_v38 = vcombine.high %v949_v25, %v949_v25  ;;  %v956_v39 = vrot.slane %v942_v27, %v2633_v16  ;;  %v2409_v22 = vld [vmem:[%s3145_s1 + $0x20] sm:$0xff] }
  0x37   :  { %2396 = vmatpush1.msk.msra.mxu0 %vm73_vm0, %v301_v4  ;;  %380 = vmatprep.mubr.f32.mxu0 %v2583_v51  ;;  %v2111_v40 = vrot.slane %v2103_v28, %v2633_v16  ;;  %v2118_v41 = vrot.slane %v2104_v35, %v2633_v16  ;;  %v2225_v46 = vrot.slane %v2217_v34, %v2633_v16 }
  0x38   :  { %v1072_v47 = vcombine.low %v1064_v20, %v1071_v26  ;;  %v1073_v48 = vcombine.high %v1064_v20, %v1071_v26  ;;  %2556 = vset.pattern.permute.xlu1 %v2585_v59  ;;  %2555 = vset.pattern.permute.xlu0 %v2585_v59  ;;  %v2424_v26 = vld [vmem:[%s3145_s1 + $0x30] sm:$0xff] }
  0x39   :  { %1990 = vrot.lane.b32.xlu1 %v2866_v13, %s2584_s16  ;;  %v2119_v13 = vcombine.high %v2111_v40, %v2111_v40 }
  0x3a   :  { %826 = vrot.lane.b32.xlu0 %v2782_v43, %s2584_s16  ;;  %v2232_v43 = vrot.slane %v2218_v36, %v2633_v16  ;;  %v1080_v52 = vrot.slane %v1072_v47, %v2633_v16  ;;  %v1087_v54 = vrot.slane %v1073_v48, %v2633_v16  ;;  %v2432_v48 = vld [vmem:[%s3145_s1 + $0x38] sm:$0xff] }
  0x3b   :  { %2466 = vmatmul.mubr.msk.f32.vlgmr.msra.gmra.mrb[0].mxu1 %vm69_vm1, %v2463_v37 }
  0x3c   :  { %1679 = vmatprep.mubr.f32.mxu1 %v2583_v51  ;;  %v2233_v53 = vcombine.low %v2225_v46, %v2232_v43  ;;  %v1088_v56 = vcombine.high %v1080_v52, %v1080_v52  ;;  %v2234_v58 = vcombine.high %v2225_v46, %v2232_v43 }
  0x3d   :  { %962 = vrot.lane.b32.xlu1 %v957_v38, %s2584_s16 }
  0x3e   :  { %960 = vrot.lane.b32.xlu0 %v956_v39, %s2584_s16  ;;  %2397 = vmatmul.mubr.msk.f32.vlgmr.msra.gmra.mrb[0].mxu0 %vm69_vm1, %v2463_v37  ;;  %v2241_v57 = vrot.slane %v2233_v53, %v2633_v16  ;;  %v2248_v63 = vrot.slane %v2234_v58, %v2633_v16 }
  0x3f   :  { %512 = vmatprep.mubr.f32.mxu0 %v2583_v51 }
  0x40   :  { %v2249_v62 = vcombine.high %v2241_v57, %v2241_v57 }
  0x41   :  { %2124 = vrot.lane.b32.xlu1 %v2119_v13, %s2584_s16 }
  0x42   :  { %2122 = vrot.lane.b32.xlu0 %v2118_v41, %s2584_s16 }
  0x45   :  { %2120 = vrot.lane.b32.xlu1 %v2111_v40, %s2584_s16 }
  0x46   :  { %958 = vrot.lane.b32.xlu0 %v949_v25, %s2584_s16 }
  0x49   :  { %1093 = vrot.lane.b32.xlu1 %v1088_v56, %s2584_s16 }
  0x4a   :  { %1091 = vrot.lane.b32.xlu0 %v1087_v54, %s2584_s16 }
  0x4d   :  { %2254 = vrot.lane.b32.xlu1 %v2249_v62, %s2584_s16 }
  0x4e   :  { %2252 = vrot.lane.b32.xlu0 %v2248_v63, %s2584_s16 }
  0x51   :  { %2250 = vrot.lane.b32.xlu1 %v2241_v57, %s2584_s16 }
  0x52   :  { %1089 = vrot.lane.b32.xlu0 %v1080_v52, %s2584_s16  ;;  %s2586_s16 = smov [#allocation2]  }
  0x53   :  { %s2354_s17 = sshll.u32 %s2586_s16, 4  ;;  %s2355_s17 = int_to_ptr.vmem [resolvable:$true] %s2354_s17 }
  0x54   :  { %p2562_p1 = scmp.lt.s32.totalorder %s2355_s17, %s2355_s17 }
  0x55   :  { %2341 = vperm.xlu1 %2556, %v2338_v1  }
  0x56   :  { %1180 = vperm.xlu0 %2555, %v2338_v1  }
  0x7f   :  { %v1603_v2 = vpop.permute.xlu1 %1602 }
  0x80   :  { %v435_v55 = vpop.permute.xlu0 %434 }
  0x83   :  { %v1601_v3 = vpop.permute.xlu1 %1600 }
  0x84   :  { %v433_v5 = vpop.permute.xlu0 %432  ;;  %v1606_v9 = vsel %vm438_vm2, %v1601_v3, %v1603_v2 }
  0x85   :  { %v439_v15 = vsel %vm438_vm2, %v433_v5, %v435_v55 }
  0x87   :  { %v1605_v16 = vpop.permute.xlu1 %1604 }
  0x88   :  { %v567_v6 = vpop.permute.xlu0 %566  ;;  %v1607_v7 = vsel %vm438_vm2, %v1603_v2, %v1605_v16  ;;  %v2440_v2 = vld [vmem:[%s3145_s1 + $0x40] sm:$0xff]  ;;  %s2557_s1 = scalar_lea.vmem %s2355_s17, 512 }
  0x89   :  { %2472 = vmatprep.subr.msk.mxu1 %vm73_vm0, %v1607_v7  ;;  %p2558_p0 = scmp.ne.s32.totalorder %s2355_s17, %s2557_s1  ;;  %p2563_p2 = scmp.lt.s32.totalorder %s2557_s1, %s2557_s1 }
  0x8a   :  { %2473 = vmatpush1.msk.msra.mxu1 %vm73_vm0, %v1606_v9 }
  0x8b   :  { %v569_v10 = vpop.permute.xlu1 %568  ;;  %2474 = vmatmul.mubr.msk.f32.vlgmr.msra.gmra.mrb[0].mxu1 %vm69_vm1, %v2401_v8  ;;  %p2564_p3 = por %p2563_p2, %p2562_p1 }
  0x8c   :  { %v437_v11 = vpop.permute.xlu0 %436  ;;  %1809 = vmatprep.mubr.f32.mxu1 %v2583_v51  ;;  %v571_v17 = vsel %vm438_vm2, %v567_v6, %v569_v10 }
  0x8d   :  { %v440_v12 = vsel %vm438_vm2, %v435_v55, %v437_v11  ;;  %p2565_p4 = pnand %p2564_p3, %p2558_p0 }
  0x8e   :  { %2402 = vmatprep.subr.msk.mxu0 %vm73_vm0, %v440_v12 }
  0x8f   :  { %2403 = vmatpush1.msk.msra.mxu0 %vm73_vm0, %v439_v15  ;;  %v1735_v29 = vpop.permute.xlu1 %1734 }
  0x90   :  { %v1733_v42 = vpop.permute.xlu0 %1732  ;;  %2410 = vmatprep.subr.msk.mxu0 %vm73_vm0, %v571_v17  ;;  %2404 = vmatmul.mubr.msk.f32.vlgmr.msra.gmra.mrb[0].mxu0 %vm69_vm1, %v2401_v8 }
  0x91   :  { %v1737_v18 = vsel %vm438_vm2, %v1733_v42, %v1735_v29  ;;  %643 = vmatprep.mubr.f32.mxu0 %v2583_v51 }
  0x92   :  { %2480 = vmatprep.subr.msk.mxu1 %vm73_vm0, %v1737_v18 }
  0x93   :  { %v1731_v19 = vpop.permute.xlu1 %1730 }
  0x94   :  { %v565_v21 = vpop.permute.xlu0 %564  ;;  %v1736_v23 = vsel %vm438_vm2, %v1731_v19, %v1733_v42 }
  0x95   :  { %v570_v24 = vsel %vm438_vm2, %v565_v21, %v567_v6  ;;  %2481 = vmatpush1.msk.msra.mxu1 %vm73_vm0, %v1736_v23 }
  0x96   :  { %2411 = vmatpush1.msk.msra.mxu0 %vm73_vm0, %v570_v24  ;;  %2482 = vmatmul.mubr.msk.f32.vlgmr.msra.gmra.mrb[0].mxu1 %vm69_vm1, %v2409_v22 }
  0x97   :  { %v700_v31 = vpop.permute.xlu1 %699  ;;  %1939 = vmatprep.mubr.f32.mxu1 %v2583_v51 }
  0x98   :  { %v698_v32 = vpop.permute.xlu0 %697  ;;  %2412 = vmatmul.mubr.msk.f32.vlgmr.msra.gmra.mrb[0].mxu0 %vm69_vm1, %v2409_v22 }
  0x99   :  { %v702_v44 = vsel %vm438_vm2, %v698_v32, %v700_v31  ;;  %774 = vmatprep.mubr.f32.mxu0 %v2583_v51 }
  0x9a   :  { %2418 = vmatprep.subr.msk.mxu0 %vm73_vm0, %v702_v44 }
  0x9b   :  { %v1865_v45 = vpop.permute.xlu1 %1864 }
  0x9c   :  { %v1863_v61 = vpop.permute.xlu0 %1862 }
  0x9d   :  { %v1867_v60 = vsel %vm438_vm2, %v1863_v61, %v1865_v45 }
  0x9e   :  { %2488 = vmatprep.subr.msk.mxu1 %vm73_vm0, %v1867_v60 }
  0x9f   :  { %v1861_v4 = vpop.permute.xlu1 %1860 }
  0xa0   :  { %v696_v49 = vpop.permute.xlu0 %695  ;;  %v1866_v0 = vsel %vm438_vm2, %v1861_v4, %v1863_v61 }
  0xa1   :  { %v701_v14 = vsel %vm438_vm2, %v696_v49, %v698_v32  ;;  %2489 = vmatpush1.msk.msra.mxu1 %vm73_vm0, %v1866_v0 }
  0xa2   :  { %2419 = vmatpush1.msk.msra.mxu0 %vm73_vm0, %v701_v14  ;;  %2490 = vmatmul.mubr.msk.f32.vlgmr.msra.gmra.mrb[0].mxu1 %vm69_vm1, %v2417_v50 }
  0xa3   :  { %2420 = vmatmul.mubr.msk.f32.vlgmr.msra.gmra.mrb[0].mxu0 %vm69_vm1, %v2417_v50  ;;  %v831_v25 = vpop.permute.xlu1 %830  ;;  %2069 = vmatprep.mubr.f32.mxu1 %v2583_v51 }
  0xa4   :  { %v829_v27 = vpop.permute.xlu0 %828  ;;  %906 = vmatprep.mubr.f32.mxu0 %v2583_v51 }
  0xa5   :  { %v834_v28 = vsel %vm832_vm3, %v829_v27, %v831_v25 }
  0xa6   :  { %2425 = vmatprep.subr.msk.mxu0 %vm73_vm0, %v834_v28 }
  0xa7   :  { %v1995_v30 = vpop.permute.xlu1 %1994 }
  0xa8   :  { %v1993_v33 = vpop.permute.xlu0 %1992 }
  0xa9   :  { %v1997_v34 = vsel %vm832_vm3, %v1993_v33, %v1995_v30 }
  0xaa   :  { %2496 = vmatprep.subr.msk.mxu1 %vm73_vm0, %v1997_v34 }
  0xab   :  { %v1991_v35 = vpop.permute.xlu1 %1990 }
  0xac   :  { %v827_v20 = vpop.permute.xlu0 %826  ;;  %v1996_v36 = vsel %vm832_vm3, %v1991_v35, %v1993_v33 }
  0xad   :  { %v833_v37 = vsel %vm832_vm3, %v827_v20, %v829_v27  ;;  %2497 = vmatpush1.msk.msra.mxu1 %vm73_vm0, %v1996_v36 }
  0xae   :  { %2426 = vmatpush1.msk.msra.mxu0 %vm73_vm0, %v833_v37  ;;  %2498 = vmatmul.mubr.msk.f32.vlgmr.msra.gmra.mrb[0].mxu1 %vm69_vm1, %v2424_v26 }
  0xaf   :  { %2427 = vmatmul.mubr.msk.f32.vlgmr.msra.gmra.mrb[0].mxu0 %vm69_vm1, %v2424_v26  ;;  %v963_v38 = vpop.permute.xlu1 %962  ;;  %2199 = vmatprep.mubr.f32.mxu1 %v2583_v51 }
  0xb0   :  { %v961_v39 = vpop.permute.xlu0 %960  ;;  %1037 = vmatprep.mubr.f32.mxu0 %v2583_v51 }
  0xb1   :  { %v965_v40 = vsel %vm832_vm3, %v961_v39, %v963_v38 }
  0xb2   :  { %2433 = vmatprep.subr.msk.mxu0 %vm73_vm0, %v965_v40 }
  0xb3   :  { %v2125_v41 = vpop.permute.xlu1 %2124 }
  0xb4   :  { %v2123_v46 = vpop.permute.xlu0 %2122 }
  0xb5   :  { %v2127_v13 = vsel %vm832_vm3, %v2123_v46, %v2125_v41 }
  0xb6   :  { %2504 = vmatprep.subr.msk.mxu1 %vm73_vm0, %v2127_v13 }
  0xb7   :  { %v2121_v47 = vpop.permute.xlu1 %2120 }
  0xb8   :  { %v959_v43 = vpop.permute.xlu0 %958  ;;  %v2126_v52 = vsel %vm832_vm3, %v2121_v47, %v2123_v46 }
  0xb9   :  { %v964_v53 = vsel %vm832_vm3, %v959_v43, %v961_v39  ;;  %2505 = vmatpush1.msk.msra.mxu1 %vm73_vm0, %v2126_v52 }
  0xba   :  { %2434 = vmatpush1.msk.msra.mxu0 %vm73_vm0, %v964_v53  ;;  %2506 = vmatmul.mubr.msk.f32.vlgmr.msra.gmra.mrb[0].mxu1 %vm69_vm1, %v2432_v48 }
  0xbb   :  { %2435 = vmatmul.mubr.msk.f32.vlgmr.msra.gmra.mrb[0].mxu0 %vm69_vm1, %v2432_v48  ;;  %v1094_v54 = vpop.permute.xlu1 %1093  ;;  %2329 = vmatprep.mubr.f32.mxu1 %v2583_v51 }
  0xbc   :  { %v1092_v56 = vpop.permute.xlu0 %1091  ;;  %1168 = vmatprep.mubr.f32.mxu0 %v2583_v51 }
  0xbd   :  { %v1096_v57 = vsel %vm832_vm3, %v1092_v56, %v1094_v54 }
  0xbe   :  { %2441 = vmatprep.subr.msk.mxu0 %vm73_vm0, %v1096_v57 }
  0xbf   :  { %v2255_v58 = vpop.permute.xlu1 %2254 }
  0xc0   :  { %v2253_v59 = vpop.permute.xlu0 %2252 }
  0xc1   :  { %v2257_v62 = vsel %vm832_vm3, %v2253_v59, %v2255_v58 }
  0xc2   :  { %2512 = vmatprep.subr.msk.mxu1 %vm73_vm0, %v2257_v62 }
  0xc3   :  { %v2251_v63 = vpop.permute.xlu1 %2250 }
  0xc4   :  { %v1090_v1 = vpop.permute.xlu0 %1089  ;;  %v2256_v55 = vsel %vm832_vm3, %v2251_v63, %v2253_v59 }
  0xc5   :  { %v1095_v51 = vsel %vm832_vm3, %v1090_v1, %v1092_v56  ;;  %2513 = vmatpush1.msk.msra.mxu1 %vm73_vm0, %v2256_v55 }
  0xc6   :  { %2442 = vmatpush1.msk.msra.mxu0 %vm73_vm0, %v1095_v51  ;;  %2514 = vmatmul.mubr.msk.f32.vlgmr.msra.gmra.mrb[0].mxu1 %vm69_vm1, %v2440_v2 }
  0xc7   :  { %2443 = vmatmul.mubr.msk.f32.vlgmr.msra.gmra.mrb[0].mxu0 %vm69_vm1, %v2440_v2 }
  0xd4   :  { %v2342_v3 = vpop.permute.xlu1 %2341 }
  0xd5   :  { %v1181_v5 = vpop.permute.xlu0 %1180 }
 0x199   :  { %v2331_v16 = vpop.f32.mrb[0].mxu1 }
 0x19a   :  { %v1170_v6 = vpop.f32.mrb[0].mxu0  ;;  %v2344_v7 = vadd.f32 %v2342_v3, %v2331_v16  ;;  %v2333_v10 = vpop.f32.mrb[1].mxu1 }
 0x19b   :  { %v1183_v8 = vadd.f32 %v1181_v5, %v1170_v6  ;;  %v1172_v9 = vpop.f32.mrb[1].mxu0  ;;  %v2345_v12 = vadd.f32 %v2342_v3, %v2333_v10 }
 0x19c   :  { %v1184_v11 = vadd.f32 %v1181_v5, %v1172_v9  ;;  %2347 = vst [vmem:[#allocation2 + $0x10] sm:$0xff] %v2344_v7 }
 0x19d   :  { %1185 = vst [vmem:[#allocation2] sm:$0xff] %v1183_v8  ;;  %2348 = vst [vmem:[#allocation2 + $0x18] sm:$0xff] %v2345_v12 }
 0x19e   :  { %1186 = vst [vmem:[#allocation2 + $0x8] sm:$0xff] %v1184_v11 }
 0x19f   :  { %2568 = shalt.err (!%p2565_p4)
}
 0x1a0   :  { %s2569_s20 = scalar_lea.hbm %s3147_s3, 512 }
 0x1a1   :  { %p2570_p5 = scmp.ne.s32.totalorder %s3147_s3, %s2569_s20  ;;  %p2573_p6 = scmp.lt.u32.totalorder %s2569_s20, %s3147_s3 }
 0x1a3   :  { %p2575_p7 = pnand %p2573_p6, %p2570_p5 }
 0x1a5   :  { %2578 = shalt.err (!%p2575_p7)
}
 0x1a6   :  { %s2587_s25 = smov 256   ;;  %s2588_s26 = smov 16  }
 0x1a7   :  { %2360 = dma.vmem_to_hbm [thread:$0]  %s2355_s17, 512, %s3147_s3, [#allocation3], %s2587_s25, %s2587_s25, %s2588_s26  }
 0x1a8   :  { %2579 = dma.done.wait [#allocation3], 512  }
 0x1a9   :  { %2580 = vsyncadd [#allocation3], 4294966784 }
 0x1aa   :  { %2364 = vsyncpa [#allocation3], 1 }

</bundles_post_ra>
